<compile_context>
chip_gen: v7x
topology: tpu7x:2x2x1
jax: 0.10.0
libtpu: 0.0.40
codegen_flags: <defaults>
</compile_context>

<pallas_src>
import functools

import jax
import jax.numpy as jnp
import numpy as np
from jax.experimental import pallas as pl
from jax.experimental.pallas import tpu as pltpu


def group_feature_sizes(D, max_M):
    sizes = [1]
    if max_M >= 1:
        sizes.append(D)
    if max_M >= 2:
        sizes.append(D + D * (D - 1) // 2)
    if max_M >= 3:
        sizes.append(D + 2 * (D * (D - 1) // 2) + D * (D - 1) * (D - 2) // 6)
    return sizes


def _pack_coefficients(weights_list, alpha, D, max_M):
    """Fold softmax(alpha) gating + per-group weights into per-monomial
    coefficients, ordered to match the kernel's canonical i<=j<=k enumeration.

    PyTorch group layouts (columns):
      group2 = [x_i^2 (D) | x_i x_j, i<j]
      group3 = [x_i^3 (D) | x_i^2 x_j, i<j | x_i x_j^2, i<j | x_i x_j x_k, i<j<k]
    """
    gating = jax.nn.softmax(alpha.astype(jnp.float32), axis=0)
    w = [wm[:, 0].astype(jnp.float32) for wm in weights_list]

    ncross = D * (D - 1) // 2
    cross_idx, c = {}, 0
    for i in range(D):
        for j in range(i + 1, D):
            cross_idx[(i, j)] = c
            c += 1
    trip_idx, t = {}, 0
    for i in range(D):
        for j in range(i + 1, D):
            for k in range(j + 1, D):
                trip_idx[(i, j, k)] = t
                t += 1

    pieces = [gating[0] * w[0]]                               # constant, (1,)
    if max_M >= 1:
        pieces.append(gating[1] * w[1])                       # linear, (D,)
    if max_M >= 2:
        w2 = gating[2] * w[2]
        vals = []
        for i in range(D):
            for j in range(i, D):
                if i == j:
                    vals.append(w2[i])                                    # x_i^2
                else:
                    vals.append(w2[D + cross_idx[(i, j)]])                # x_i x_j
        pieces.append(jnp.stack(vals))
    if max_M >= 3:
        w3 = gating[3] * w[3]
        vals = []
        for i in range(D):
            for j in range(i, D):
                for k in range(j, D):
                    if i == j == k:
                        vals.append(w3[i])                                # x_i^3
                    elif i == j:
                        vals.append(w3[D + cross_idx[(i, k)]])            # x_i^2 x_k
                    elif j == k:
                        vals.append(w3[D + ncross + cross_idx[(i, j)]])   # x_i x_j^2
                    else:
                        vals.append(w3[D + 2 * ncross + trip_idx[(i, j, k)]])
        pieces.append(jnp.stack(vals))
    return jnp.concatenate(pieces, axis=0)


def _logistic_kernel(coef_ref, x_ref, o_ref, *, D, max_M):
    """Per-tile forward.

    coef_ref : (P,) f32 in SMEM   -- folded gating * weights (canonical order).
    x_ref    : (D, block_rows, 128) f32 VMEM -- lane-dense feature slabs.
    o_ref    : (block_rows, 128) f32 VMEM    -- lane-dense probabilities.
    """
    xs = [x_ref[d].astype(jnp.float32) for d in range(D)]     # D dense slabs
    f = jnp.full(o_ref.shape, coef_ref[0], dtype=jnp.float32)  # constant term
    idx = 1
    if max_M >= 1:
        for i in range(D):
            f = f + coef_ref[idx] * xs[i]
            idx += 1
    pairs = {}
    if max_M >= 2:
        for i in range(D):
            for j in range(i, D):
                p = xs[i] * xs[j]
                pairs[(i, j)] = p
                f = f + coef_ref[idx] * p
                idx += 1
    if max_M >= 3:
        for i in range(D):
            for j in range(i, D):
                p = pairs[(i, j)]
                for k in range(j, D):
                    f = f + coef_ref[idx] * (p * xs[k])
                    idx += 1
    o_ref[...] = jax.nn.sigmoid(f).astype(o_ref.dtype)


def learnable_logistic_forward(x, weights_list, alpha, *, max_M, block_rows=64):
    """x: (N, D); weights_list: list of (p_m, 1); alpha: (G,). Returns (N,) probs.

    block_rows * 128 samples are processed per grid step (default 8192).
    """
    N, D = x.shape
    LANE, SUBLANE = 128, 8

    coef = _pack_coefficients(weights_list, alpha, D, max_M)   # (P,) f32 -> SMEM

    n_lane_rows = pl.cdiv(N, LANE)
    block_rows = max(SUBLANE, min(block_rows, n_lane_rows))
    block_rows = pl.cdiv(block_rows, SUBLANE) * SUBLANE        # multiple of 8
    grid_steps = pl.cdiv(n_lane_rows, block_rows)
    rows_total = grid_steps * block_rows
    n_pad = rows_total * LANE

    # Lane-dense relayout (layout plumbing in the wrapper, not compute):
    # sample index -> (sublane-row, lane); feature index -> leading axis.
    x_pad = jnp.pad(x.astype(jnp.float32), ((0, n_pad - N), (0, 0)))
    xt = x_pad.T.reshape(D, rows_total, LANE)

    out = pl.pallas_call(
        functools.partial(_logistic_kernel, D=D, max_M=max_M),
        out_shape=jax.ShapeDtypeStruct((rows_total, LANE), jnp.float32),
        grid_spec=pltpu.PrefetchScalarGridSpec(
            num_scalar_prefetch=0,
            grid=(grid_steps,),
            in_specs=[
                pl.BlockSpec(memory_space=pltpu.MemorySpace.SMEM),        # coefficients
                pl.BlockSpec((D, block_rows, LANE), lambda i: (0, i, 0)),  # X slabs
            ],
            out_specs=pl.BlockSpec((block_rows, LANE), lambda i: (i, 0)),
        ),
        compiler_params=pltpu.CompilerParams(
            dimension_semantics=("parallel",)),
    )(coef, xt)
    return out.reshape(n_pad)[:N]


def _reference_forward(x, weights_list, alpha, *, max_M):
    """Pure-JAX reference mirroring the PyTorch module forward exactly."""
    N, D = x.shape
    groups = [jnp.ones((N, 1), x.dtype)]
    if max_M >= 1:
        groups.append(x)
    if max_M >= 2:
        cols = [x * x]
        cols += [(x[:, i] * x[:, j])[:, None]
                 for i in range(D) for j in range(i + 1, D)]
        groups.append(jnp.concatenate(cols, axis=1))
    if max_M >= 3:
        cols = [x * x * x]
        cols += [(x[:, i] ** 2 * x[:, j])[:, None]
                 for i in range(D) for j in range(i + 1, D)]
        cols += [(x[:, i] * x[:, j] ** 2)[:, None]
                 for i in range(D) for j in range(i + 1, D)]
        cols += [(x[:, i] * x[:, j] * x[:, k])[:, None]
                 for i in range(D) for j in range(i + 1, D)
                 for k in range(j + 1, D)]
        groups.append(jnp.concatenate(cols, axis=1))
    contribs = [g.astype(jnp.float32) @ w.astype(jnp.float32)
                for g, w in zip(groups, weights_list)]
    contrib = jnp.concatenate(contribs, axis=1)
    gating = jax.nn.softmax(alpha.astype(jnp.float32), axis=0)
    f = jnp.sum(contrib * gating, axis=1)
    return jax.nn.sigmoid(f)


if __name__ == "__main__":
    # Small demo shapes: N=2000 samples (not a tile multiple -> exercises
    # padding), D=4 features, polynomial degree up to max_M=3.
    N, D, MAX_M = 2000, 4, 3
    sizes = group_feature_sizes(D, MAX_M)

    key = jax.random.PRNGKey(0)
    keys = jax.random.split(key, 2 + len(sizes))
    x = jax.random.normal(keys[0], (N, D), dtype=jnp.float32)
    # Module inits params to zeros; use small deterministic random values so
    # the check is non-trivial.
    weights_list = [
        0.1 * jax.random.normal(keys[1 + m], (p, 1), dtype=jnp.float32)
        for m, p in enumerate(sizes)
    ]
    alpha = 0.1 * jax.random.normal(keys[1 + len(sizes)], (len(sizes),),
                                    dtype=jnp.float32)

    # block_rows=8 -> 1024 samples/step, 2 grid steps at this demo size.
    out = learnable_logistic_forward(x, weights_list, alpha,
                                     max_M=MAX_M, block_rows=8)
    out = jax.block_until_ready(out)

    ref = _reference_forward(x, weights_list, alpha, max_M=MAX_M)
    np.testing.assert_allclose(np.asarray(out), np.asarray(ref),
                               rtol=1e-5, atol=1e-6)

    assert out.shape == (N,)
    print("KERNEL_OK")
</pallas_src>

<mosaic_0001>
module attributes {stable_mosaic.version = 11 : i64} {
  func.func @_logistic_kernel(%arg0: i32, %arg1: memref<35xf32, #tpu.memory_space<smem>>, %arg2: memref<4x8x128xf32, #tpu.memory_space<vmem>>, %arg3: memref<8x128xf32, #tpu.memory_space<vmem>>) attributes {dimension_semantics = [#tpu.dimension_semantics<parallel>], iteration_bounds = array<i64: 2>, scalar_prefetch = 0 : i64, scratch_operands = 0 : i64, tpu.core_type = #tpu.core_type<tc>, window_params = [{transform_indices = @transform_0, window_bounds = array<i64: 35>}, {transform_indices = @transform_1, window_bounds = array<i64: 4, 8, 128>}, {transform_indices = @transform_2, window_bounds = array<i64: 8, 128>}]} {
    %c0 = arith.constant 0 : index
    %c0_0 = arith.constant 0 : index
    %c0_1 = arith.constant 0 : index
    %0 = vector.load %arg2[%c0, %c0_0, %c0_1] : memref<4x8x128xf32, #tpu.memory_space<vmem>>, vector<1x8x128xf32>
    %1 = vector.shape_cast %0 : vector<1x8x128xf32> to vector<8x128xf32>
    %c1 = arith.constant 1 : index
    %c0_2 = arith.constant 0 : index
    %c0_3 = arith.constant 0 : index
    %2 = vector.load %arg2[%c1, %c0_2, %c0_3] : memref<4x8x128xf32, #tpu.memory_space<vmem>>, vector<1x8x128xf32>
    %3 = vector.shape_cast %2 : vector<1x8x128xf32> to vector<8x128xf32>
    %c2 = arith.constant 2 : index
    %c0_4 = arith.constant 0 : index
    %c0_5 = arith.constant 0 : index
    %4 = vector.load %arg2[%c2, %c0_4, %c0_5] : memref<4x8x128xf32, #tpu.memory_space<vmem>>, vector<1x8x128xf32>
    %5 = vector.shape_cast %4 : vector<1x8x128xf32> to vector<8x128xf32>
    %c3 = arith.constant 3 : index
    %c0_6 = arith.constant 0 : index
    %c0_7 = arith.constant 0 : index
    %6 = vector.load %arg2[%c3, %c0_6, %c0_7] : memref<4x8x128xf32, #tpu.memory_space<vmem>>, vector<1x8x128xf32>
    %7 = vector.shape_cast %6 : vector<1x8x128xf32> to vector<8x128xf32>
    %c0_8 = arith.constant 0 : index
    %8 = memref.load %arg1[%c0_8] : memref<35xf32, #tpu.memory_space<smem>>
    %9 = vector.broadcast %8 : f32 to vector<8x128xf32>
    %c1_9 = arith.constant 1 : index
    %10 = memref.load %arg1[%c1_9] : memref<35xf32, #tpu.memory_space<smem>>
    %11 = vector.broadcast %10 : f32 to vector<8x128xf32>
    %12 = arith.mulf %11, %1 : vector<8x128xf32>
    %13 = arith.addf %9, %12 : vector<8x128xf32>
    %c2_10 = arith.constant 2 : index
    %14 = memref.load %arg1[%c2_10] : memref<35xf32, #tpu.memory_space<smem>>
    %15 = vector.broadcast %14 : f32 to vector<8x128xf32>
    %16 = arith.mulf %15, %3 : vector<8x128xf32>
    %17 = arith.addf %13, %16 : vector<8x128xf32>
    %c3_11 = arith.constant 3 : index
    %18 = memref.load %arg1[%c3_11] : memref<35xf32, #tpu.memory_space<smem>>
    %19 = vector.broadcast %18 : f32 to vector<8x128xf32>
    %20 = arith.mulf %19, %5 : vector<8x128xf32>
    %21 = arith.addf %17, %20 : vector<8x128xf32>
    %c4 = arith.constant 4 : index
    %22 = memref.load %arg1[%c4] : memref<35xf32, #tpu.memory_space<smem>>
    %23 = vector.broadcast %22 : f32 to vector<8x128xf32>
    %24 = arith.mulf %23, %7 : vector<8x128xf32>
    %25 = arith.addf %21, %24 : vector<8x128xf32>
    %26 = arith.mulf %1, %1 : vector<8x128xf32>
    %c5 = arith.constant 5 : index
    %27 = memref.load %arg1[%c5] : memref<35xf32, #tpu.memory_space<smem>>
    %28 = vector.broadcast %27 : f32 to vector<8x128xf32>
    %29 = arith.mulf %28, %26 : vector<8x128xf32>
    %30 = arith.addf %25, %29 : vector<8x128xf32>
    %31 = arith.mulf %1, %3 : vector<8x128xf32>
    %c6 = arith.constant 6 : index
    %32 = memref.load %arg1[%c6] : memref<35xf32, #tpu.memory_space<smem>>
    %33 = vector.broadcast %32 : f32 to vector<8x128xf32>
    %34 = arith.mulf %33, %31 : vector<8x128xf32>
    %35 = arith.addf %30, %34 : vector<8x128xf32>
    %36 = arith.mulf %1, %5 : vector<8x128xf32>
    %c7 = arith.constant 7 : index
    %37 = memref.load %arg1[%c7] : memref<35xf32, #tpu.memory_space<smem>>
    %38 = vector.broadcast %37 : f32 to vector<8x128xf32>
    %39 = arith.mulf %38, %36 : vector<8x128xf32>
    %40 = arith.addf %35, %39 : vector<8x128xf32>
    %41 = arith.mulf %1, %7 : vector<8x128xf32>
    %c8 = arith.constant 8 : index
    %42 = memref.load %arg1[%c8] : memref<35xf32, #tpu.memory_space<smem>>
    %43 = vector.broadcast %42 : f32 to vector<8x128xf32>
    %44 = arith.mulf %43, %41 : vector<8x128xf32>
    %45 = arith.addf %40, %44 : vector<8x128xf32>
    %46 = arith.mulf %3, %3 : vector<8x128xf32>
    %c9 = arith.constant 9 : index
    %47 = memref.load %arg1[%c9] : memref<35xf32, #tpu.memory_space<smem>>
    %48 = vector.broadcast %47 : f32 to vector<8x128xf32>
    %49 = arith.mulf %48, %46 : vector<8x128xf32>
    %50 = arith.addf %45, %49 : vector<8x128xf32>
    %51 = arith.mulf %3, %5 : vector<8x128xf32>
    %c10 = arith.constant 10 : index
    %52 = memref.load %arg1[%c10] : memref<35xf32, #tpu.memory_space<smem>>
    %53 = vector.broadcast %52 : f32 to vector<8x128xf32>
    %54 = arith.mulf %53, %51 : vector<8x128xf32>
    %55 = arith.addf %50, %54 : vector<8x128xf32>
    %56 = arith.mulf %3, %7 : vector<8x128xf32>
    %c11 = arith.constant 11 : index
    %57 = memref.load %arg1[%c11] : memref<35xf32, #tpu.memory_space<smem>>
    %58 = vector.broadcast %57 : f32 to vector<8x128xf32>
    %59 = arith.mulf %58, %56 : vector<8x128xf32>
    %60 = arith.addf %55, %59 : vector<8x128xf32>
    %61 = arith.mulf %5, %5 : vector<8x128xf32>
    %c12 = arith.constant 12 : index
    %62 = memref.load %arg1[%c12] : memref<35xf32, #tpu.memory_space<smem>>
    %63 = vector.broadcast %62 : f32 to vector<8x128xf32>
    %64 = arith.mulf %63, %61 : vector<8x128xf32>
    %65 = arith.addf %60, %64 : vector<8x128xf32>
    %66 = arith.mulf %5, %7 : vector<8x128xf32>
    %c13 = arith.constant 13 : index
    %67 = memref.load %arg1[%c13] : memref<35xf32, #tpu.memory_space<smem>>
    %68 = vector.broadcast %67 : f32 to vector<8x128xf32>
    %69 = arith.mulf %68, %66 : vector<8x128xf32>
    %70 = arith.addf %65, %69 : vector<8x128xf32>
    %71 = arith.mulf %7, %7 : vector<8x128xf32>
    %c14 = arith.constant 14 : index
    %72 = memref.load %arg1[%c14] : memref<35xf32, #tpu.memory_space<smem>>
    %73 = vector.broadcast %72 : f32 to vector<8x128xf32>
    %74 = arith.mulf %73, %71 : vector<8x128xf32>
    %75 = arith.addf %70, %74 : vector<8x128xf32>
    %c15 = arith.constant 15 : index
    %76 = memref.load %arg1[%c15] : memref<35xf32, #tpu.memory_space<smem>>
    %77 = arith.mulf %26, %1 : vector<8x128xf32>
    %78 = vector.broadcast %76 : f32 to vector<8x128xf32>
    %79 = arith.mulf %78, %77 : vector<8x128xf32>
    %80 = arith.addf %75, %79 : vector<8x128xf32>
    %c16 = arith.constant 16 : index
    %81 = memref.load %arg1[%c16] : memref<35xf32, #tpu.memory_space<smem>>
    %82 = arith.mulf %26, %3 : vector<8x128xf32>
    %83 = vector.broadcast %81 : f32 to vector<8x128xf32>
    %84 = arith.mulf %83, %82 : vector<8x128xf32>
    %85 = arith.addf %80, %84 : vector<8x128xf32>
    %c17 = arith.constant 17 : index
    %86 = memref.load %arg1[%c17] : memref<35xf32, #tpu.memory_space<smem>>
    %87 = arith.mulf %26, %5 : vector<8x128xf32>
    %88 = vector.broadcast %86 : f32 to vector<8x128xf32>
    %89 = arith.mulf %88, %87 : vector<8x128xf32>
    %90 = arith.addf %85, %89 : vector<8x128xf32>
    %c18 = arith.constant 18 : index
    %91 = memref.load %arg1[%c18] : memref<35xf32, #tpu.memory_space<smem>>
    %92 = arith.mulf %26, %7 : vector<8x128xf32>
    %93 = vector.broadcast %91 : f32 to vector<8x128xf32>
    %94 = arith.mulf %93, %92 : vector<8x128xf32>
    %95 = arith.addf %90, %94 : vector<8x128xf32>
    %c19 = arith.constant 19 : index
    %96 = memref.load %arg1[%c19] : memref<35xf32, #tpu.memory_space<smem>>
    %97 = arith.mulf %31, %3 : vector<8x128xf32>
    %98 = vector.broadcast %96 : f32 to vector<8x128xf32>
    %99 = arith.mulf %98, %97 : vector<8x128xf32>
    %100 = arith.addf %95, %99 : vector<8x128xf32>
    %c20 = arith.constant 20 : index
    %101 = memref.load %arg1[%c20] : memref<35xf32, #tpu.memory_space<smem>>
    %102 = arith.mulf %31, %5 : vector<8x128xf32>
    %103 = vector.broadcast %101 : f32 to vector<8x128xf32>
    %104 = arith.mulf %103, %102 : vector<8x128xf32>
    %105 = arith.addf %100, %104 : vector<8x128xf32>
    %c21 = arith.constant 21 : index
    %106 = memref.load %arg1[%c21] : memref<35xf32, #tpu.memory_space<smem>>
    %107 = arith.mulf %31, %7 : vector<8x128xf32>
    %108 = vector.broadcast %106 : f32 to vector<8x128xf32>
    %109 = arith.mulf %108, %107 : vector<8x128xf32>
    %110 = arith.addf %105, %109 : vector<8x128xf32>
    %c22 = arith.constant 22 : index
    %111 = memref.load %arg1[%c22] : memref<35xf32, #tpu.memory_space<smem>>
    %112 = arith.mulf %36, %5 : vector<8x128xf32>
    %113 = vector.broadcast %111 : f32 to vector<8x128xf32>
    %114 = arith.mulf %113, %112 : vector<8x128xf32>
    %115 = arith.addf %110, %114 : vector<8x128xf32>
    %c23 = arith.constant 23 : index
    %116 = memref.load %arg1[%c23] : memref<35xf32, #tpu.memory_space<smem>>
    %117 = arith.mulf %36, %7 : vector<8x128xf32>
    %118 = vector.broadcast %116 : f32 to vector<8x128xf32>
    %119 = arith.mulf %118, %117 : vector<8x128xf32>
    %120 = arith.addf %115, %119 : vector<8x128xf32>
    %c24 = arith.constant 24 : index
    %121 = memref.load %arg1[%c24] : memref<35xf32, #tpu.memory_space<smem>>
    %122 = arith.mulf %41, %7 : vector<8x128xf32>
    %123 = vector.broadcast %121 : f32 to vector<8x128xf32>
    %124 = arith.mulf %123, %122 : vector<8x128xf32>
    %125 = arith.addf %120, %124 : vector<8x128xf32>
    %c25 = arith.constant 25 : index
    %126 = memref.load %arg1[%c25] : memref<35xf32, #tpu.memory_space<smem>>
    %127 = arith.mulf %46, %3 : vector<8x128xf32>
    %128 = vector.broadcast %126 : f32 to vector<8x128xf32>
    %129 = arith.mulf %128, %127 : vector<8x128xf32>
    %130 = arith.addf %125, %129 : vector<8x128xf32>
    %c26 = arith.constant 26 : index
    %131 = memref.load %arg1[%c26] : memref<35xf32, #tpu.memory_space<smem>>
    %132 = arith.mulf %46, %5 : vector<8x128xf32>
    %133 = vector.broadcast %131 : f32 to vector<8x128xf32>
    %134 = arith.mulf %133, %132 : vector<8x128xf32>
    %135 = arith.addf %130, %134 : vector<8x128xf32>
    %c27 = arith.constant 27 : index
    %136 = memref.load %arg1[%c27] : memref<35xf32, #tpu.memory_space<smem>>
    %137 = arith.mulf %46, %7 : vector<8x128xf32>
    %138 = vector.broadcast %136 : f32 to vector<8x128xf32>
    %139 = arith.mulf %138, %137 : vector<8x128xf32>
    %140 = arith.addf %135, %139 : vector<8x128xf32>
    %c28 = arith.constant 28 : index
    %141 = memref.load %arg1[%c28] : memref<35xf32, #tpu.memory_space<smem>>
    %142 = arith.mulf %51, %5 : vector<8x128xf32>
    %143 = vector.broadcast %141 : f32 to vector<8x128xf32>
    %144 = arith.mulf %143, %142 : vector<8x128xf32>
    %145 = arith.addf %140, %144 : vector<8x128xf32>
    %c29 = arith.constant 29 : index
    %146 = memref.load %arg1[%c29] : memref<35xf32, #tpu.memory_space<smem>>
    %147 = arith.mulf %51, %7 : vector<8x128xf32>
    %148 = vector.broadcast %146 : f32 to vector<8x128xf32>
    %149 = arith.mulf %148, %147 : vector<8x128xf32>
    %150 = arith.addf %145, %149 : vector<8x128xf32>
    %c30 = arith.constant 30 : index
    %151 = memref.load %arg1[%c30] : memref<35xf32, #tpu.memory_space<smem>>
    %152 = arith.mulf %56, %7 : vector<8x128xf32>
    %153 = vector.broadcast %151 : f32 to vector<8x128xf32>
    %154 = arith.mulf %153, %152 : vector<8x128xf32>
    %155 = arith.addf %150, %154 : vector<8x128xf32>
    %c31 = arith.constant 31 : index
    %156 = memref.load %arg1[%c31] : memref<35xf32, #tpu.memory_space<smem>>
    %157 = arith.mulf %61, %5 : vector<8x128xf32>
    %158 = vector.broadcast %156 : f32 to vector<8x128xf32>
    %159 = arith.mulf %158, %157 : vector<8x128xf32>
    %160 = arith.addf %155, %159 : vector<8x128xf32>
    %c32 = arith.constant 32 : index
    %161 = memref.load %arg1[%c32] : memref<35xf32, #tpu.memory_space<smem>>
    %162 = arith.mulf %61, %7 : vector<8x128xf32>
    %163 = vector.broadcast %161 : f32 to vector<8x128xf32>
    %164 = arith.mulf %163, %162 : vector<8x128xf32>
    %165 = arith.addf %160, %164 : vector<8x128xf32>
    %c33 = arith.constant 33 : index
    %166 = memref.load %arg1[%c33] : memref<35xf32, #tpu.memory_space<smem>>
    %167 = arith.mulf %66, %7 : vector<8x128xf32>
    %168 = vector.broadcast %166 : f32 to vector<8x128xf32>
    %169 = arith.mulf %168, %167 : vector<8x128xf32>
    %170 = arith.addf %165, %169 : vector<8x128xf32>
    %c34 = arith.constant 34 : index
    %171 = memref.load %arg1[%c34] : memref<35xf32, #tpu.memory_space<smem>>
    %172 = arith.mulf %71, %7 : vector<8x128xf32>
    %173 = vector.broadcast %171 : f32 to vector<8x128xf32>
    %174 = arith.mulf %173, %172 : vector<8x128xf32>
    %175 = arith.addf %170, %174 : vector<8x128xf32>
    %176 = arith.negf %175 : vector<8x128xf32>
    %177 = math.exp %176 : vector<8x128xf32>
    %cst = arith.constant 1.000000e+00 : f32
    %178 = vector.broadcast %cst : f32 to vector<8x128xf32>
    %179 = arith.addf %178, %177 : vector<8x128xf32>
    %180 = arith.divf %178, %179 : vector<8x128xf32>
    %c0_12 = arith.constant 0 : index
    %c0_13 = arith.constant 0 : index
    %181 = vector.load %arg3[%c0_12, %c0_13] : memref<8x128xf32, #tpu.memory_space<vmem>>, vector<8x128xf32>
    tpu.vector_store %arg3[%c0_12, %c0_13], %180 {strides = array<i32>} : memref<8x128xf32, #tpu.memory_space<vmem>>, vector<8x128xf32>,
    return
  }
  func.func @transform_0(%arg0: i32) -> i32 {
    %c0_i32 = arith.constant 0 : i32
    %c0_i32_0 = arith.constant 0 : i32
    return %c0_i32 : i32
  }
  func.func @transform_1(%arg0: i32) -> (i32, i32, i32) {
    %c0_i32 = arith.constant 0 : i32
    %c0_i32_0 = arith.constant 0 : i32
    %c0_i32_1 = arith.constant 0 : i32
    return %c0_i32, %arg0, %c0_i32_0 : i32, i32, i32
  }
  func.func @transform_2(%arg0: i32) -> (i32, i32) {
    %c0_i32 = arith.constant 0 : i32
    %c0_i32_0 = arith.constant 0 : i32
    return %arg0, %c0_i32 : i32, i32
  }
}

</mosaic_0001>

<bundles_post_ra>
// kernel: tpu_custom_call.1
= control target key start
LH: loop header
LB: loop body
LE: loop exit
PB: predicated region body
PF: predicated region fallthrough
CT: control target
= control target key end

     0   :  { %7 = vsyncpa [#allocation5], 0  ;;  %s994_s0 = inlined_call_operand.hbm [shape: f32[35], index: 0, kind: input, shape index: {}]   ;;  %s995_s1 = inlined_call_operand.hbm [shape: f32[4,16,128], index: 1, kind: input, shape index: {}]   ;;  %s996_s2 = inlined_call_operand.hbm [shape: f32[16,128], index: 2, kind: output, shape index: {}]  }
   0x1   :  { %8 = vsyncpa [#allocation3], 0 }
   0x2   :  { %10 = vsyncpa [#allocation3 + $0x1], 0 }
   0x3   :  { %11 = vsyncpa [#allocation4], 0 }
   0x4   :  { %13 = vsyncpa [#allocation4 + $0x1], 0  ;;  %s703_s9 = smov 0   ;;  %s705_s10 = smov 0  }
   0x5   :  { %s707_s11 = smov 0   ;;  %s709_s12 = smov 0  }
   0x6 LB: > { %s724_s13 = sadd.s32 4294967295, %s680_s12   ;;  %s451_s14 = sadd.s32 4294967294, %s680_s12   ;;  %s680_s12 = sphi %s709_s12, %s1016_s12   ;;  %s676_s11 = sphi %s707_s11, %s1015_s11   ;;  %s672_s10 = sphi %s705_s10, %s1014_s10   ;;  %s668_s9 = sphi %s703_s9, %s1013_s9  }
   0x7   : > { %s728_s15 = sadd.s32 1, %s680_s12   ;;  %s47_s16 = sadd.s32 1, %s676_s11 }
   0x8   : > { %s44_s17 = ssub.s32 %s680_s12, %s728_s15  ;;  %p54_p0 = scmp.ne.s32.totalorder %s676_s11, %s672_s10 }
   0x9   : > { %p45_p1 = scmp.eq.s32.totalorder %s44_s17, 0  ;;  %p55_p2 = scmp.eq.s32.totalorder %s680_s12, 0 }
   0xa   : > { %p60_p3 = scmp.ne.s32.totalorder %s672_s10, %s668_s9  ;;  %p997_p4 = scmp.eq.s32.totalorder %s724_s13, 0 }
   0xb   : > { %s740_s18 = scalar_select %p45_p1, %s676_s11, %s47_s16  }
   0xc   : > { %p742_p5 = por %p55_p2, %p54_p0  ;;  %p748_p6 = por %p997_p4, %p60_p3 }
   0xd   : > { %p84_p7 = scmp.eq.s32.totalorder %s724_s13, 1  ;;  %p90_p8 = scmp.eq.s32.totalorder %s451_s14, 1 }
   0xe   : > { %s1001_s20 = scalar_select %p748_p6, 1, 0 }
   0xf   : > { %p452_p9 = scmp.ge.s32.totalorder %s680_s12, 1  ;;  %p97_p10 = scmp.lt.s32.totalorder %s680_s12, 3 }
  0x10   : > { %p755_p11 = por %p84_p7, %p54_p0  ;;  %p759_p12 = por %p90_p8, %p60_p3 }
  0x11   : > { %p763_p13 = pnand %p452_p9, %p97_p10  ;;  %p524_p4 = scmp.lt.s32.totalorder %s680_s12, 2 }
  0x12   : > { %s1002_s21 = scalar_select %p755_p11, 1, 0 }
  0x13   : > { %s1003_s22 = scalar_select %p759_p12, 1, 0 }
  0x14   : > { %p511_p2 = pneg %p763_p13  ;;  %s119_s24 = sand.u32 1, %s676_s11  }
  0x15   : > { %s456_s25 = sshll.u32 %s680_s12, 7  ;;  %p1005_p6 = scmp.eq.s32.totalorder %s724_s13, 0 }
  0x16   : > { %p777_p7 = pnand %p524_p4, %p742_p5  ;;  %s455_s27 = sshll.u32 %s119_s24, 5 }
  0x17   : > { %p512_p0 = pnand %p511_p2, %p1005_p6  ;;  %s567_s30 = scalar_lea.hbm %s994_s0, 16 }
  0x18   : > { %p568_p3 = scmp.ne.s32.totalorder %s994_s0, %s567_s30  ;;  %p574_p6 = scmp.lt.u32.totalorder %s567_s30, %s994_s0 }
  0x19   : > { %p569_p8 = pneg %p512_p0 }
  0x1b   : > { %p570_p9 = pnand %p569_p8, %p568_p3 }
  0x1d   : > { %p571_p10 = pneg %p570_p9 }
  0x1f   : > { %p576_p4 = pnand %p574_p6, %p571_p10 }
  0x21   : > { %579 = shalt.err (!%p576_p4)
}
  0x22   : > { %s682_s7 = smov [#allocation2]   ;;  %s796_s19 = scalar_lea.hbm %s995_s1, %s456_s25 }
  0x23   : > { %514 = dma.hbm_to_smem (!%p512_p0), %s994_s0, 16, %s682_s7, [#allocation5]  }
  0x24   : > { %s123_s28 = scalar_lea.vmem [#allocation6], %s455_s27  ;;  %s800_s30 = scalar_lea.sflag [#allocation3], %s119_s24 }
  0x25   : > { %s129_s29 = sshll.u32 %s123_s28, 4  ;;  %s580_s3 = scalar_lea.hbm %s796_s19, 512  ;;  %s798_s29 = int_to_ptr.vmem [resolvable:$true] %s129_s29 }
  0x26   : > { %p581_p5 = scmp.ne.s32.totalorder %s796_s19, %s580_s3  ;;  %p582_p2 = pneg %p777_p7 }
  0x27   : > { %s585_s5 = scalar_lea.hbm %s995_s1, 1024  ;;  %p586_p8 = scmp.lt.u32.totalorder %s796_s19, %s995_s1 }
  0x28   : > { %p583_p0 = pnand %p582_p2, %p581_p5  ;;  %p587_p9 = scmp.lt.u32.totalorder %s585_s5, %s580_s3 }
  0x29   : > { %p589_p6 = scmp.lt.u32.totalorder %s580_s3, %s796_s19 }
  0x2a   : > { %p584_p3 = pneg %p583_p0  ;;  %p588_p10 = por %p587_p9, %p586_p8 }
  0x2c   : > { %p590_p4 = por %p589_p6, %p588_p10 }
  0x2e   : > { %p591_p1 = pnand %p590_p4, %p584_p3 }
  0x30   : > { %594 = shalt.err (!%p591_p1)
}
  0x31   : > { %s595_s24 = scalar_lea.vmem %s798_s29, 512  ;;  %s683_s27 = smov [#allocation6]  }
  0x32   : > { %p596_p5 = scmp.ne.s32.totalorder %s798_s29, %s595_s24  ;;  %s600_s8 = sshll.u32 %s683_s27, 4  ;;  %s601_s8 = int_to_ptr.vmem [resolvable:$false] %s600_s8 }
  0x33   : > { %s602_s14 = scalar_lea.vmem %s601_s8, 1024  ;;  %p603_p11 = scmp.lt.s32.totalorder %s798_s29, %s601_s8 }
  0x34   : > { %p598_p0 = pnand %p596_p5, %p582_p2  ;;  %p604_p8 = scmp.lt.s32.totalorder %s602_s14, %s595_s24 }
  0x36   : > { %p599_p12 = pneg %p598_p0  ;;  %p605_p9 = por %p604_p8, %p603_p11 }
  0x38   : > { %p606_p10 = pnand %p605_p9, %p599_p12 }
  0x3a   : > { %609 = shalt.err (!%p606_p10)
}
  0x3b   : > { %s684_s16 = smov 256   ;;  %s685_s17 = smov 128  }
  0x3c   : > { %s686_s28 = smov 8   ;;  %141 = sbr.rel (%p763_p13) target bundleno = 191 (0xbf), region = 28 }
  0x3d   : > { %518 = dma.hbm_to_vmem [thread:$0]  (!%p777_p7), %s796_s19, 512, %s798_s29, %s800_s30, %s684_s16, %s685_s17, %s686_s28  }
  0x3e   : > { %p1007_p1 = scmp.eq.s32.totalorder (!%p763_p13), %s724_s13, 0 }
  0x43   : > { %655 = dma.done.wait (%p1007_p1), [#allocation5], 16   ;;  %p1008_p2 = pmov %p1007_p1 }
  0x44   : > { %s835_s3 = sand.u32 1, %s672_s10   ;;  %p1009_p11 = scmp.ne.s32.totalorder %s1001_s20, 0 }
  0x45   : > { %657 = vsyncadd (%p1008_p2), [#allocation5], 4294967280  ;;  %s459_s25 = sshll.u32 %s835_s3, 5  ;;  %s148_s4 = scalar_lea.sflag [#allocation3], %s835_s3 }
  0x46   : > { %s151_s5 = scalar_lea.vmem [#allocation6], %s459_s25 }
  0x47   : > { %659 = dma.done.wait (%p1009_p11), %s148_s4, 512  }
  0x48   : > { %661 = vsyncadd (%p1009_p11), %s148_s4, 4294966784 }
  0x49   : > { %156 = sfence }
  0x4a   : > { %s180_s23 = sld [smem:[#allocation2]]  ;;  %s464_s26 = sld [smem:[#allocation2 + $0x1]]  ;;  %v843_v0 = vld [vmem:[%s151_s5] sm:$0xff]  ;;  %v845_v1 = vld [vmem:[%s151_s5 + $0x8] sm:$0xff]  ;;  %v847_v2 = vld [vmem:[%s151_s5 + $0x10] sm:$0xff] }
  0x4b   : > { %s465_s19 = sld [smem:[#allocation2 + $0x2]]  ;;  %s466_s29 = sld [smem:[#allocation2 + $0x3]]  ;;  %v850_v8 = vld [vmem:[%s151_s5 + $0x18] sm:$0xff]  ;;  %v856_v13 = vmul.f32 %v843_v0, %v843_v0  ;;  %v861_v17 = vmul.f32 %v845_v1, %v843_v0  ;;  %v866_v21 = vmul.f32 %v847_v2, %v843_v0  ;;  %v876_v29 = vmul.f32 %v845_v1, %v845_v1 }
  0x4c   : > { %s467_s30 = sld [smem:[#allocation2 + $0x4]]  ;;  %s468_s6 = sld [smem:[#allocation2 + $0x5]]  ;;  %v871_v25 = vmul.f32 %v850_v8, %v843_v0  ;;  %v881_v33 = vmul.f32 %v847_v2, %v845_v1  ;;  %v886_v37 = vmul.f32 %v850_v8, %v845_v1  ;;  %v891_v41 = vmul.f32 %v847_v2, %v847_v2 }
  0x4d   : > { %s469_s7 = sld [smem:[#allocation2 + $0x6]]  ;;  %s470_s24 = sld [smem:[#allocation2 + $0x7]]  ;;  %v896_v45 = vmul.f32 %v850_v8, %v847_v2  ;;  %v901_v49 = vmul.f32 %v850_v8, %v850_v8  ;;  %v249_v53 = vmul.f32 %v856_v13, %v843_v0  ;;  %v254_v57 = vmul.f32 %v845_v1, %v856_v13 }
  0x4e   : > { %s471_s20 = sld [smem:[#allocation2 + $0x8]]  ;;  %s472_s27 = sld [smem:[#allocation2 + $0x9]]  ;;  %v259_v61 = vmul.f32 %v847_v2, %v856_v13 }
  0x4f   : > { %s473_s8 = sld [smem:[#allocation2 + $0xa]]  ;;  %s474_s14 = sld [smem:[#allocation2 + $0xb]] }
  0x50   : > { %v181_v3 = vstv %s180_s23  ;;  %v183_v4 = vstv %s464_s26  ;;  %s475_s16 = sld [smem:[#allocation2 + $0xc]]  ;;  %s476_s17 = sld [smem:[#allocation2 + $0xd]] }
  0x51   : > { %v184_v5 = vmul.f32 %v183_v4, %v843_v0  ;;  %v187_v6 = vstv %s465_s19  ;;  %v191_v7 = vstv %s466_s29  ;;  %s477_s28 = sld [smem:[#allocation2 + $0xe]]  ;;  %s478_s25 = sld [smem:[#allocation2 + $0xf]]  ;;  %v264_v0 = vmul.f32 %v850_v8, %v856_v13 }
  0x52   : > { %v188_v9 = vmul.f32 %v845_v1, %v187_v6  ;;  %v195_v10 = vstv %s467_s30  ;;  %v192_v12 = vmul.f32 %v847_v2, %v191_v7  ;;  %v200_v14 = vstv %s468_s6  ;;  %s479_s4 = sld [smem:[#allocation2 + $0x10]]  ;;  %s480_s5 = sld [smem:[#allocation2 + $0x11]] }
  0x53   : > { %v185_v11 = vadd.f32 %v184_v5, %v181_v3  ;;  %v196_v16 = vmul.f32 %v850_v8, %v195_v10  ;;  %v205_v18 = vstv %s469_s7  ;;  %v201_v20 = vmul.f32 %v200_v14, %v856_v13  ;;  %s481_s23 = sld [smem:[#allocation2 + $0x12]]  ;;  %s482_s26 = sld [smem:[#allocation2 + $0x13]] }
  0x54   : > { %v210_v22 = vstv %s470_s24  ;;  %v206_v24 = vmul.f32 %v205_v18, %v861_v17  ;;  %v215_v26 = vstv %s471_s20  ;;  %v220_v30 = vstv %s472_s27  ;;  %s483_s19 = sld [smem:[#allocation2 + $0x14]]  ;;  %s484_s29 = sld [smem:[#allocation2 + $0x15]] }
  0x55   : > { %v189_v15 = vadd.f32 %v188_v9, %v185_v11  ;;  %v211_v28 = vmul.f32 %v210_v22, %v866_v21  ;;  %v216_v32 = vmul.f32 %v215_v26, %v871_v25  ;;  %v225_v34 = vstv %s473_s8  ;;  %s485_s30 = sld [smem:[#allocation2 + $0x16]]  ;;  %s486_s6 = sld [smem:[#allocation2 + $0x17]] }
  0x56   : > { %v221_v36 = vmul.f32 %v220_v30, %v876_v29  ;;  %v230_v38 = vstv %s474_s14  ;;  %v226_v40 = vmul.f32 %v225_v34, %v881_v33  ;;  %v235_v42 = vstv %s475_s16  ;;  %s487_s7 = sld [smem:[#allocation2 + $0x18]]  ;;  %s488_s24 = sld [smem:[#allocation2 + $0x19]] }
  0x57   : > { %v193_v19 = vadd.f32 %v192_v12, %v189_v15  ;;  %v231_v44 = vmul.f32 %v230_v38, %v886_v37  ;;  %v240_v46 = vstv %s476_s17  ;;  %v236_v48 = vmul.f32 %v235_v42, %v891_v41  ;;  %s489_s20 = sld [smem:[#allocation2 + $0x1a]]  ;;  %s490_s27 = sld [smem:[#allocation2 + $0x1b]] }
  0x58   : > { %v245_v50 = vstv %s477_s28  ;;  %v241_v52 = vmul.f32 %v240_v46, %v896_v45  ;;  %v250_v54 = vstv %s478_s25  ;;  %v255_v58 = vstv %s479_s4  ;;  %s491_s8 = sld [smem:[#allocation2 + $0x1c]]  ;;  %s492_s14 = sld [smem:[#allocation2 + $0x1d]] }
  0x59   : > { %v197_v23 = vadd.f32 %v196_v16, %v193_v19  ;;  %v246_v56 = vmul.f32 %v245_v50, %v901_v49  ;;  %v251_v60 = vmul.f32 %v250_v54, %v249_v53  ;;  %v260_v62 = vstv %s480_s5  ;;  %s493_s16 = sld [smem:[#allocation2 + $0x1e]]  ;;  %s494_s17 = sld [smem:[#allocation2 + $0x1f]] }
  0x5a   : > { %v256_v3 = vmul.f32 %v255_v58, %v254_v57  ;;  %v265_v4 = vstv %s481_s23  ;;  %v261_v6 = vmul.f32 %v260_v62, %v259_v61  ;;  %v269_v7 = vmul.f32 %v845_v1, %v861_v17  ;;  %s495_s28 = sld [smem:[#allocation2 + $0x20]]  ;;  %s496_s25 = sld [smem:[#allocation2 + $0x21]] }
  0x5b   : > { %v202_v27 = vadd.f32 %v201_v20, %v197_v23  ;;  %v270_v9 = vstv %s482_s26  ;;  %v266_v11 = vmul.f32 %v265_v4, %v264_v0  ;;  %v274_v12 = vmul.f32 %v847_v2, %v861_v17  ;;  %s497_s4 = sld [smem:[#allocation2 + $0x22]]  ;;  %s460_s5 = sshll.u32 %s835_s3, 3 }
  0x5c   : > { %v275_v14 = vstv %s483_s19  ;;  %v271_v16 = vmul.f32 %v270_v9, %v269_v7  ;;  %v279_v13 = vmul.f32 %v850_v8, %v861_v17  ;;  %v280_v18 = vstv %s484_s29  ;;  %s500_s23 = sshll.u32 %s724_s13, 7  ;;  %s172_s26 = scalar_lea.vmem [#allocation7], %s460_s5 }
  0x5d   : > { %v207_v31 = vadd.f32 %v206_v24, %v202_v27  ;;  %v276_v20 = vmul.f32 %v275_v14, %v274_v12  ;;  %v284_v22 = vmul.f32 %v847_v2, %v866_v21  ;;  %v285_v23 = vstv %s485_s30  ;;  %s369_s19 = sshll.u32 %s172_s26, 4  ;;  %p1010_p13 = scmp.ne.s32.totalorder %s1002_s21, 0  ;;  %s952_s19 = int_to_ptr.vmem [resolvable:$true] %s369_s19 }
  0x5e   : > { %v281_v26 = vmul.f32 %v280_v18, %v279_v13  ;;  %v289_v27 = vmul.f32 %v850_v8, %v866_v21  ;;  %v294_v17 = vmul.f32 %v850_v8, %v871_v25  ;;  %v300_v38 = vstv %s488_s24  ;;  %s610_s24 = scalar_lea.vmem %s952_s19, 128  ;;  %s687_s13 = smov [#allocation7]  }
  0x5f   : > { %v212_v35 = vadd.f32 %v211_v28, %v207_v31  ;;  %v290_v28 = vstv %s486_s6  ;;  %v286_v31 = vmul.f32 %v285_v23, %v284_v22  ;;  %v304_v21 = vmul.f32 %v847_v2, %v876_v29  ;;  %s950_s6 = scalar_lea.hbm %s996_s2, %s500_s23  ;;  %p611_p12 = scmp.ne.s32.totalorder %s952_s19, %s610_s24 }
  0x60   : > { %v305_v42 = vstv %s489_s20  ;;  %v309_v25 = vmul.f32 %v850_v8, %v876_v29  ;;  %v310_v46 = vstv %s490_s27  ;;  %v315_v50 = vstv %s491_s8  ;;  %s614_s20 = sshll.u32 %s687_s13, 4  ;;  %s615_s20 = int_to_ptr.vmem [resolvable:$false] %s614_s20 }
  0x61   : > { %v217_v39 = vadd.f32 %v216_v32, %v212_v35  ;;  %v295_v32 = vstv %s487_s7  ;;  %v291_v35 = vmul.f32 %v290_v28, %v289_v27  ;;  %v319_v53 = vmul.f32 %v850_v8, %v881_v33  ;;  %s356_s7 = scalar_lea.sflag [#allocation4], %s835_s3  ;;  %p612_p7 = pnand %p611_p12, %p1010_p13 }
  0x62   : > { %v320_v54 = vstv %s492_s14  ;;  %v325_v57 = vstv %s493_s16  ;;  %v330_v61 = vstv %s494_s17  ;;  %v345_v9 = vstv %s497_s4  ;;  %s616_s27 = scalar_lea.vmem %s615_s20, 256  ;;  %p617_p6 = scmp.lt.s32.totalorder %s952_s19, %s615_s20 }
  0x63   : > { %v222_v43 = vadd.f32 %v221_v36, %v217_v39  ;;  %v299_v36 = vmul.f32 %v845_v1, %v876_v29  ;;  %v314_v1 = vmul.f32 %v847_v2, %v881_v33  ;;  %v324_v29 = vmul.f32 %v850_v8, %v886_v37  ;;  %p613_p3 = pneg %p612_p7  ;;  %p618_p4 = scmp.lt.s32.totalorder %s616_s27, %s610_s24 }
  0x64   : > { %v334_v33 = vmul.f32 %v850_v8, %v891_v41  ;;  %v340_v37 = vstv %s496_s25 }
  0x65   : > { %v227_v47 = vadd.f32 %v226_v40, %v222_v43  ;;  %v296_v40 = vmul.f32 %v295_v32, %v294_v17  ;;  %p619_p5 = por %p618_p4, %p617_p6 }
  0x67   : > { %v232_v51 = vadd.f32 %v231_v44, %v227_v47  ;;  %v301_v44 = vmul.f32 %v300_v38, %v299_v36  ;;  %p620_p0 = pnand %p619_p5, %p613_p3 }
  0x69   : > { %v237_v55 = vadd.f32 %v236_v48, %v232_v51  ;;  %v306_v48 = vmul.f32 %v305_v42, %v304_v21 }
  0x6b   : > { %v242_v59 = vadd.f32 %v241_v52, %v237_v55  ;;  %v311_v52 = vmul.f32 %v310_v46, %v309_v25 }
  0x6d   : > { %v247_v63 = vadd.f32 %v246_v56, %v242_v59  ;;  %v316_v56 = vmul.f32 %v315_v50, %v314_v1  ;;  %v321_v59 = vmul.f32 %v320_v54, %v319_v53 }
  0x6f   : > { %v252_v5 = vadd.f32 %v251_v60, %v247_v63  ;;  %v329_v60 = vmul.f32 %v847_v2, %v891_v41  ;;  %v326_v63 = vmul.f32 %v325_v57, %v324_v29  ;;  %v344_v2 = vmul.f32 %v850_v8, %v901_v49 }
  0x71   : > { %v257_v10 = vadd.f32 %v256_v3, %v252_v5  ;;  %v335_v3 = vstv %s495_s28  ;;  %v331_v4 = vmul.f32 %v330_v61, %v329_v60  ;;  %v339_v5 = vmul.f32 %v850_v8, %v896_v45 }
  0x72   : > { %v336_v7 = vmul.f32 %v335_v3, %v334_v33  ;;  %v346_v14 = vmul.f32 %v345_v9, %v344_v2 }
  0x73   : > { %v262_v15 = vadd.f32 %v261_v6, %v257_v10 }
  0x75   : > { %v267_v19 = vadd.f32 %v266_v11, %v262_v15  ;;  %v341_v11 = vmul.f32 %v340_v37, %v339_v5 }
  0x77   : > { %v272_v24 = vadd.f32 %v271_v16, %v267_v19 }
  0x79   : > { %v277_v30 = vadd.f32 %v276_v20, %v272_v24 }
  0x7b   : > { %v282_v34 = vadd.f32 %v281_v26, %v277_v30 }
  0x7d   : > { %v287_v39 = vadd.f32 %v286_v31, %v282_v34 }
  0x7f   : > { %v292_v43 = vadd.f32 %v291_v35, %v287_v39 }
  0x81   : > { %v297_v47 = vadd.f32 %v296_v40, %v292_v43 }
  0x83   : > { %v302_v51 = vadd.f32 %v301_v44, %v297_v47 }
  0x85   : > { %v307_v55 = vadd.f32 %v306_v48, %v302_v51 }
  0x87   : > { %v312_v58 = vadd.f32 %v311_v52, %v307_v55 }
  0x89   : > { %v317_v62 = vadd.f32 %v316_v56, %v312_v58 }
  0x8b   : > { %v322_v0 = vadd.f32 %v321_v59, %v317_v62 }
  0x8d   : > { %v327_v6 = vadd.f32 %v326_v63, %v322_v0 }
  0x8f   : > { %v332_v10 = vadd.f32 %v331_v4, %v327_v6 }
  0x91   : > { %v337_v12 = vadd.f32 %v336_v7, %v332_v10 }
  0x93   : > { %v342_v41 = vadd.f32 %v341_v11, %v337_v12 }
  0x95   : > { %v347_v15 = vadd.f32 %v346_v14, %v342_v41 }
  0x97   : > { %v498_v16 = vmul.f32 -1.442695, %v347_v15 }
  0x99   : > { %563 = vpow2.f32 %v498_v16 }
  0xa3   : > { %v564_v45 = vpop.eup %563 }
  0xa4   : > { %v351_v13 = vadd.f32 1.0, %v564_v45 }
  0xa6   : > { %565 = vrcp.f32 %v351_v13 }
  0xb0   : > { %v566_v8 = vpop.eup %565 }
  0xb1   : > { %354 = vst [vmem:[%s172_s26] sm:$0xff] %v566_v8 }
  0xb2   : > { %623 = shalt.err (!%p620_p0)
}
  0xb3   : > { %s624_s3 = scalar_lea.hbm %s950_s6, 128  ;;  %s628_s16 = scalar_lea.hbm %s996_s2, 256 }
  0xb4   : > { %p625_p8 = scmp.ne.s32.totalorder %s950_s6, %s624_s3  ;;  %p629_p1 = scmp.lt.u32.totalorder %s950_s6, %s996_s2 }
  0xb5   : > { %p630_p2 = scmp.lt.u32.totalorder %s628_s16, %s624_s3  ;;  %p632_p12 = scmp.lt.u32.totalorder %s624_s3, %s950_s6 }
  0xb6   : > { %p626_p9 = pnand %p625_p8, %p1010_p13 }
  0xb7   : > { %p631_p11 = por %p630_p2, %p629_p1 }
  0xb8   : > { %p627_p10 = pneg %p626_p9 }
  0xb9   : > { %p633_p7 = por %p632_p12, %p631_p11 }
  0xbb   : > { %p634_p3 = pnand %p633_p7, %p627_p10 }
  0xbd   : > { %637 = shalt.err (!%p634_p3)
}
  0xbe   : > { %509 = dma.vmem_to_hbm [thread:$0]  (%p1010_p13), %s952_s19, 128, %s950_s6, %s356_s7  }
  0xbf PF: > { %s381_s25 = sand.u32 1, %s668_s9   ;;  %p1011_p6 = scmp.ne.s32.totalorder %s1003_s22, 0 }
  0xc0   : > { %p1012_p4 = scmp.ge.s32.totalorder %s680_s12, 2  ;;  %s382_s4 = scalar_lea.sflag [#allocation4], %s381_s25 }
  0xc2   : > { %p520_p5 = pnand %p1012_p4, %p1011_p6 }
  0xc4   : > { %663 = dma.done.wait (!%p520_p5), %s382_s4, 128  }
  0xc5   : > { %665 = vsyncadd (!%p520_p5), %s382_s4, 4294967168  ;;  %p16_p0 = scmp.ge.s32.totalorder %s728_s15, 4   ;;  %s1013_s9 = smov %s672_s10 }
  0xc6   : > { %s1014_s10 = smov %s676_s11  ;;  %s1015_s11 = smov %s740_s18 }
  0xc7   : > { %s1016_s12 = smov %s728_s15  ;;  %18 = sbr.rel (!%p16_p0) target bundleno = 6 (0x6), region = 81 }
  0xce   :  { %387 = vsyncpa [#allocation3], 1 }
  0xcf   :  { %389 = vsyncpa [#allocation3 + $0x1], 1 }
  0xd0   :  { %390 = vsyncpa [#allocation4], 1 }
  0xd1   :  { %392 = vsyncpa [#allocation4 + $0x1], 1 }
  0xd2   :  { %393 = vsyncpa [#allocation5], 1 }
  0xd3   :  { %395 = vsyncpa [#allocation5 + $0x1], 1 }

</bundles_post_ra>
